<compile_context>
chip_gen: v7x
topology: tpu7x:2x2x1
jax: 0.10.0
libtpu: 0.0.40
codegen_flags: <defaults>
</compile_context>

<pallas_src>
import functools

import numpy as np
import jax
import jax.numpy as jnp
from jax.experimental import pallas as pl
from jax.experimental.pallas import tpu as pltpu

WIN_SIZE = 11
WIN_SIGMA = 1.5
DATA_RANGE = 1.0
C1 = (0.01 * DATA_RANGE) ** 2
C2 = (0.03 * DATA_RANGE) ** 2
SSIM_WEIGHT = 0.05


def _gaussian_taps():
    coords = np.arange(WIN_SIZE, dtype=np.float64) - WIN_SIZE // 2
    g = np.exp(-(coords ** 2) / (2.0 * WIN_SIGMA ** 2))
    g /= g.sum()
    return g


_GAUSS = _gaussian_taps()


def _round_up(x, m):
    return ((x + m - 1) // m) * m


def _band_matrices(H, W, dtype):
    """Banded Gaussian matrices restricted to the valid output window.

    GhT: (Ho_pad, H) with rows >= Ho all-zero; Gw: (W, Wo_pad) with cols >= Wo
    all-zero.  The top-left (Ho, Wo) block of GhT @ img @ Gw is exactly the
    'valid' separable 11-tap blur; the padded rows/cols are exact zeros.
    """
    Ho = H - WIN_SIZE + 1
    Wo = W - WIN_SIZE + 1
    Ho_pad = min(_round_up(Ho, 8), H)       # sublane-aligned, never above H
    Wo_pad = min(_round_up(Wo, 128), W)     # lane-aligned, never above W
    ght = np.zeros((Ho_pad, H), np.float32)
    for i in range(Ho):
        ght[i, i:i + WIN_SIZE] = _GAUSS
    gw = np.zeros((W, Wo_pad), np.float32)
    for j in range(Wo):
        gw[j:j + WIN_SIZE, j] = _GAUSS
    return jnp.asarray(ght, dtype), jnp.asarray(gw, dtype), Ho_pad, Wo_pad


def _sum2d(x):
    """Full 2-D reduction kept as a (1, 1) array (clean VMEM store)."""
    return jnp.sum(jnp.sum(x, axis=1, keepdims=True), axis=0, keepdims=True)


def _matching_loss_kernel(loss_type, ght_ref, gw_ref, pred_ref, targ_ref,
                          out_ref, sig_ref):
    x = pred_ref[0, 0].astype(jnp.float32)          # (H, W)
    y = targ_ref[0, 0].astype(jnp.float32)          # (H, W)
    H, W = x.shape
    Ho = H - WIN_SIZE + 1
    Wo = W - WIN_SIZE + 1
    blur_dtype = sig_ref.dtype                      # f32 or bf16

    # ---- elementwise l1 / l2, mean over (H, W) for this (b, c) plane ----
    diff = x - y
    elem = jnp.abs(diff) if loss_type == "l1" else diff * diff
    loss_s = _sum2d(elem) * (1.0 / float(H * W))    # (1, 1)

    # ---- SSIM: separable Gaussian blur as two MXU matmul passes ----
    # Write the 5 blur inputs into the persistent (5H, W) VMEM scratch
    # (static row slices; no jnp.concatenate temporary).
    sig_ref[0 * H:1 * H, :] = x.astype(blur_dtype)
    sig_ref[1 * H:2 * H, :] = y.astype(blur_dtype)
    sig_ref[2 * H:3 * H, :] = (x * x).astype(blur_dtype)
    sig_ref[3 * H:4 * H, :] = (y * y).astype(blur_dtype)
    sig_ref[4 * H:5 * H, :] = (x * y).astype(blur_dtype)

    ght = ght_ref[...]                              # (Ho_pad, H)
    gw = gw_ref[...]                                # (W, Wo_pad)

    # W-pass: one matmul for all 5 signals, f32 accumulation.
    tmp = jnp.dot(sig_ref[...], gw, preferred_element_type=jnp.float32)
    tmp = tmp.astype(blur_dtype)                    # no-op in the f32 path

    # H-pass: shared GhT applied to each (H, Wo_pad) segment.
    mu1 = jnp.dot(ght, tmp[0 * H:1 * H], preferred_element_type=jnp.float32)
    mu2 = jnp.dot(ght, tmp[1 * H:2 * H], preferred_element_type=jnp.float32)
    e_xx = jnp.dot(ght, tmp[2 * H:3 * H], preferred_element_type=jnp.float32)
    e_yy = jnp.dot(ght, tmp[3 * H:4 * H], preferred_element_type=jnp.float32)
    e_xy = jnp.dot(ght, tmp[4 * H:5 * H], preferred_element_type=jnp.float32)

    mu1_sq = mu1 * mu1
    mu2_sq = mu2 * mu2
    mu1_mu2 = mu1 * mu2
    sigma1_sq = e_xx - mu1_sq
    sigma2_sq = e_yy - mu2_sq
    sigma12 = e_xy - mu1_mu2

    num = (2.0 * mu1_mu2 + C1) * (2.0 * sigma12 + C2)
    den = (mu1_sq + mu2_sq + C1) * (sigma1_sq + sigma2_sq + C2)
    # Outside the valid (Ho, Wo) window, mu/sigma are exactly zero (band
    # matrices zero those rows/cols), so num == den == C1*C2 bit-exactly and
    # (num - den) == 0.  Therefore the full-plane sum of (ssim - 1) equals the
    # valid-region sum: no misaligned slice, and the approx reciprocal cannot
    # leak error from the padded region.
    ssim_m1 = (num - den) * pl.reciprocal(den, approx=True)     # ssim - 1
    ssim_s = _sum2d(ssim_m1) * (1.0 / float(Ho * Wo))           # mean(ssim)-1

    # Packed per-(b, c) scalars: [elementwise-loss mean, mean(ssim) - 1].
    out_ref[0, 0] = jnp.concatenate([loss_s, ssim_s], axis=1)   # (1, 2)


def matching_loss(predict, target, weights=None, loss_type="l1",
                  is_weighted=False, blur_in_bf16=False):
    """Pallas implementation of MatchingLoss.forward. Returns a scalar."""
    assert loss_type in ("l1", "l2"), f"invalid loss type {loss_type}"
    B, C, H, W = predict.shape
    assert H >= WIN_SIZE and W >= WIN_SIZE, "spatial dims must be >= 11 for SSIM"

    blur_dtype = jnp.bfloat16 if blur_in_bf16 else jnp.float32
    ght, gw, Ho_pad, Wo_pad = _band_matrices(H, W, blur_dtype)

    # Explicit scoped-VMEM budget sized from the real per-step footprint.
    in_elt = predict.dtype.itemsize
    blur_elt = 2 if blur_in_bf16 else 4
    est = (2 * 2 * H * W * in_elt                     # double-buffered pred/targ planes
           + (Ho_pad * H + W * Wo_pad) * blur_elt     # single-buffered constants
           + 5 * H * W * blur_elt                     # stacked-signal scratch
           + 5 * H * Wo_pad * 4                       # W-pass output
           + 14 * Ho_pad * Wo_pad * 4)                # blur outputs + SSIM epilogue temps
    vmem_limit = int(min(64 << 20, max(16 << 20, 2 * est)))   # cap at v7x physical

    kernel = functools.partial(_matching_loss_kernel, loss_type)
    out = pl.pallas_call(
        kernel,
        grid=(B, C),
        in_specs=[
            # Constant band matrices: resident once, single-buffered.
            pl.BlockSpec((Ho_pad, H), lambda b, c: (0, 0),
                         pipeline_mode=pl.Buffered(1)),
            pl.BlockSpec((W, Wo_pad), lambda b, c: (0, 0),
                         pipeline_mode=pl.Buffered(1)),
            pl.BlockSpec((1, 1, H, W), lambda b, c: (b, c, 0, 0)),   # predict plane
            pl.BlockSpec((1, 1, H, W), lambda b, c: (b, c, 0, 0)),   # target plane
        ],
        out_specs=pl.BlockSpec((1, 1, 1, 2), lambda b, c: (b, c, 0, 0)),
        out_shape=jax.ShapeDtypeStruct((B, C, 1, 2), jnp.float32),
        scratch_shapes=[pltpu.VMEM((5 * H, W), blur_dtype)],
        compiler_params=pltpu.CompilerParams(
            dimension_semantics=("parallel", "parallel"),
            vmem_limit_bytes=vmem_limit),
    )(ght, gw, predict, target)

    # Tiny final reduction + weighting in plain JAX (no in-kernel accumulator,
    # so the parallel grid stays race-free on v7x megacore).
    loss_bc = out[..., 0].reshape(B, C)
    ssim_m1_bc = out[..., 1].reshape(B, C)
    per_batch = jnp.mean(loss_bc, axis=1)          # (B,) == mean over C*H*W
    ssim_loss = -jnp.mean(ssim_m1_bc)              # == 1 - mean(SSIM)
    composite = per_batch + SSIM_WEIGHT * ssim_loss
    if is_weighted and weights is not None:
        composite = jnp.asarray(weights, jnp.float32).reshape(B) * composite
    return jnp.mean(composite)


# ---------------------------------------------------------------------------
# Pure-JAX reference mirroring the PyTorch forward (slice-based blur).
# ---------------------------------------------------------------------------
def _blur_valid(img):
    """Separable 11-tap Gaussian blur, valid padding, per-channel. (B,C,H,W)."""
    B, C, H, W = img.shape
    Ho = H - WIN_SIZE + 1
    Wo = W - WIN_SIZE + 1
    acc_h = float(_GAUSS[0]) * img[:, :, 0:Ho, :]
    for k in range(1, WIN_SIZE):
        acc_h = acc_h + float(_GAUSS[k]) * img[:, :, k:k + Ho, :]
    acc = float(_GAUSS[0]) * acc_h[:, :, :, 0:Wo]
    for k in range(1, WIN_SIZE):
        acc = acc + float(_GAUSS[k]) * acc_h[:, :, :, k:k + Wo]
    return acc


def matching_loss_ref(predict, target, weights=None, loss_type="l1", is_weighted=False):
    x = predict.astype(jnp.float32)
    y = target.astype(jnp.float32)
    B = x.shape[0]
    diff = x - y
    elem = jnp.abs(diff) if loss_type == "l1" else diff * diff
    per_batch = jnp.mean(elem.reshape(B, -1), axis=1)                   # (B,)

    mu1 = _blur_valid(x)
    mu2 = _blur_valid(y)
    mu1_sq, mu2_sq, mu1_mu2 = mu1 * mu1, mu2 * mu2, mu1 * mu2
    sigma1_sq = _blur_valid(x * x) - mu1_sq
    sigma2_sq = _blur_valid(y * y) - mu2_sq
    sigma12 = _blur_valid(x * y) - mu1_mu2
    cs_map = (2.0 * sigma12 + C2) / (sigma1_sq + sigma2_sq + C2)
    ssim_map = ((2.0 * mu1_mu2 + C1) / (mu1_sq + mu2_sq + C1)) * cs_map
    ssim_loss = 1.0 - jnp.mean(ssim_map)

    composite = per_batch + SSIM_WEIGHT * ssim_loss
    if is_weighted and weights is not None:
        composite = jnp.asarray(weights, jnp.float32).reshape(B) * composite
    return jnp.mean(composite)


if __name__ == "__main__":
    key = jax.random.PRNGKey(0)
    k1, k2, k3 = jax.random.split(key, 3)
    B, C, H, W = 2, 3, 16, 16  # spatial >= 11 required by the SSIM window
    predict = jax.random.uniform(k1, (B, C, H, W), jnp.float32)
    target = jax.random.uniform(k2, (B, C, H, W), jnp.float32)
    weights = jax.random.uniform(k3, (B,), jnp.float32)

    # default config: loss_type='l1', is_weighted=False (f32 blur path)
    out = matching_loss(predict, target)
    jax.block_until_ready(out)
    ref = matching_loss_ref(predict, target)
    # tolerance covers MXU accumulation order + the approximate EUP reciprocal
    assert jnp.allclose(out, ref, rtol=1e-4, atol=2e-4), (out, ref)

    # weighted l2 variant
    out_w = matching_loss(predict, target, weights=weights, loss_type="l2",
                          is_weighted=True)
    jax.block_until_ready(out_w)
    ref_w = matching_loss_ref(predict, target, weights=weights, loss_type="l2",
                              is_weighted=True)
    assert jnp.allclose(out_w, ref_w, rtol=1e-4, atol=2e-4), (out_w, ref_w)

    # bf16 blur matmuls (MXU-peak path); loose sanity tolerance because the
    # E[x^2]-mu^2 cancellation loses precision in bf16 (documented trade-off).
    out_bf16 = matching_loss(predict, target, blur_in_bf16=True)
    jax.block_until_ready(out_bf16)
    assert jnp.allclose(out_bf16, ref, rtol=0.0, atol=2e-2), (out_bf16, ref)

    print("KERNEL_OK")
</pallas_src>

<mosaic_0001>
module attributes {stable_mosaic.version = 11 : i64} {
  func.func @_matching_loss_kernel(%arg0: i32, %arg1: i32, %arg2: memref<8x16xf32, #tpu.memory_space<vmem>>, %arg3: memref<16x16xf32, #tpu.memory_space<vmem>>, %arg4: memref<1x1x16x16xf32, #tpu.memory_space<vmem>>, %arg5: memref<1x1x16x16xf32, #tpu.memory_space<vmem>>, %arg6: memref<1x1x1x2xf32, #tpu.memory_space<vmem>>, %arg7: memref<80x16xf32, #tpu.memory_space<vmem>>) attributes {dimension_semantics = [#tpu.dimension_semantics<parallel>, #tpu.dimension_semantics<parallel>], iteration_bounds = array<i64: 2, 3>, scalar_prefetch = 0 : i64, scratch_operands = 1 : i64, tpu.core_type = #tpu.core_type<tc>, window_params = [{pipeline_mode = #tpu.pipeline_mode<synchronous>, transform_indices = @transform_0, window_bounds = array<i64: 8, 16>}, {pipeline_mode = #tpu.pipeline_mode<synchronous>, transform_indices = @transform_1, window_bounds = array<i64: 16, 16>}, {transform_indices = @transform_2, window_bounds = array<i64: 1, 1, 16, 16>}, {transform_indices = @transform_3, window_bounds = array<i64: 1, 1, 16, 16>}, {transform_indices = @transform_4, window_bounds = array<i64: 1, 1, 1, 2>}]} {
    %c0 = arith.constant 0 : index
    %c0_0 = arith.constant 0 : index
    %c0_1 = arith.constant 0 : index
    %c0_2 = arith.constant 0 : index
    %0 = vector.load %arg4[%c0, %c0_0, %c0_1, %c0_2] : memref<1x1x16x16xf32, #tpu.memory_space<vmem>>, vector<1x1x16x16xf32>
    %1 = vector.shape_cast %0 : vector<1x1x16x16xf32> to vector<16x16xf32>
    %c0_3 = arith.constant 0 : index
    %c0_4 = arith.constant 0 : index
    %c0_5 = arith.constant 0 : index
    %c0_6 = arith.constant 0 : index
    %2 = vector.load %arg5[%c0_3, %c0_4, %c0_5, %c0_6] : memref<1x1x16x16xf32, #tpu.memory_space<vmem>>, vector<1x1x16x16xf32>
    %3 = vector.shape_cast %2 : vector<1x1x16x16xf32> to vector<16x16xf32>
    %4 = arith.subf %1, %3 : vector<16x16xf32>
    %5 = math.absf %4 : vector<16x16xf32>
    %cst = arith.constant dense<0.000000e+00> : vector<16xf32>
    %6 = vector.multi_reduction <add>, %5, %cst [1] : vector<16x16xf32> to vector<16xf32>
    %7 = vector.shape_cast %6 : vector<16xf32> to vector<16x1xf32>
    %cst_7 = arith.constant dense<0.000000e+00> : vector<1xf32>
    %8 = vector.multi_reduction <add>, %7, %cst_7 [0] : vector<16x1xf32> to vector<1xf32>
    %9 = vector.shape_cast %8 : vector<1xf32> to vector<1x1xf32>
    %cst_8 = arith.constant 3.906250e-03 : f32
    %10 = vector.broadcast %cst_8 : f32 to vector<1x1xf32>
    %11 = arith.mulf %9, %10 : vector<1x1xf32>
    %c0_9 = arith.constant 0 : index
    %c0_10 = arith.constant 0 : index
    %12 = vector.load %arg7[%c0_9, %c0_10] : memref<80x16xf32, #tpu.memory_space<vmem>>, vector<16x16xf32>
    tpu.vector_store %arg7[%c0_9, %c0_10], %1 {strides = array<i32>} : memref<80x16xf32, #tpu.memory_space<vmem>>, vector<16x16xf32>,
    %c16 = arith.constant 16 : index
    %c0_11 = arith.constant 0 : index
    %13 = vector.load %arg7[%c16, %c0_11] : memref<80x16xf32, #tpu.memory_space<vmem>>, vector<16x16xf32>
    tpu.vector_store %arg7[%c16, %c0_11], %3 {strides = array<i32>} : memref<80x16xf32, #tpu.memory_space<vmem>>, vector<16x16xf32>,
    %14 = arith.mulf %1, %1 : vector<16x16xf32>
    %c32 = arith.constant 32 : index
    %c0_12 = arith.constant 0 : index
    %15 = vector.load %arg7[%c32, %c0_12] : memref<80x16xf32, #tpu.memory_space<vmem>>, vector<16x16xf32>
    tpu.vector_store %arg7[%c32, %c0_12], %14 {strides = array<i32>} : memref<80x16xf32, #tpu.memory_space<vmem>>, vector<16x16xf32>,
    %16 = arith.mulf %3, %3 : vector<16x16xf32>
    %c48 = arith.constant 48 : index
    %c0_13 = arith.constant 0 : index
    %17 = vector.load %arg7[%c48, %c0_13] : memref<80x16xf32, #tpu.memory_space<vmem>>, vector<16x16xf32>
    tpu.vector_store %arg7[%c48, %c0_13], %16 {strides = array<i32>} : memref<80x16xf32, #tpu.memory_space<vmem>>, vector<16x16xf32>,
    %18 = arith.mulf %1, %3 : vector<16x16xf32>
    %c64 = arith.constant 64 : index
    %c0_14 = arith.constant 0 : index
    %19 = vector.load %arg7[%c64, %c0_14] : memref<80x16xf32, #tpu.memory_space<vmem>>, vector<16x16xf32>
    tpu.vector_store %arg7[%c64, %c0_14], %18 {strides = array<i32>} : memref<80x16xf32, #tpu.memory_space<vmem>>, vector<16x16xf32>,
    %c0_15 = arith.constant 0 : index
    %c0_16 = arith.constant 0 : index
    %20 = vector.load %arg2[%c0_15, %c0_16] : memref<8x16xf32, #tpu.memory_space<vmem>>, vector<8x16xf32>
    %c0_17 = arith.constant 0 : index
    %c0_18 = arith.constant 0 : index
    %21 = vector.load %arg3[%c0_17, %c0_18] : memref<16x16xf32, #tpu.memory_space<vmem>>, vector<16x16xf32>
    %c0_19 = arith.constant 0 : index
    %c0_20 = arith.constant 0 : index
    %22 = vector.load %arg7[%c0_19, %c0_20] : memref<80x16xf32, #tpu.memory_space<vmem>>, vector<80x16xf32>
    %cst_21 = arith.constant dense<0.000000e+00> : vector<80x16xf32>
    %23 = tpu.matmul %22, %21, %cst_21 {dimension_numbers = #tpu.dot_dimension_numbers<[1], [0], [0], [1], [0, 0, 1, 1], [], []>} : vector<80x16xf32>, vector<16x16xf32>, vector<80x16xf32> -> vector<80x16xf32>
    %24 = vector.extract_strided_slice %23 {offsets = [0, 0], sizes = [16, 16], strides = [1, 1]} : vector<80x16xf32> to vector<16x16xf32>
    %cst_22 = arith.constant dense<0.000000e+00> : vector<8x16xf32>
    %25 = tpu.matmul %20, %24, %cst_22 {dimension_numbers = #tpu.dot_dimension_numbers<[1], [0], [0], [1], [0, 0, 1, 1], [], []>} : vector<8x16xf32>, vector<16x16xf32>, vector<8x16xf32> -> vector<8x16xf32>
    %26 = vector.extract_strided_slice %23 {offsets = [16, 0], sizes = [16, 16], strides = [1, 1]} : vector<80x16xf32> to vector<16x16xf32>
    %cst_23 = arith.constant dense<0.000000e+00> : vector<8x16xf32>
    %27 = tpu.matmul %20, %26, %cst_23 {dimension_numbers = #tpu.dot_dimension_numbers<[1], [0], [0], [1], [0, 0, 1, 1], [], []>} : vector<8x16xf32>, vector<16x16xf32>, vector<8x16xf32> -> vector<8x16xf32>
    %28 = vector.extract_strided_slice %23 {offsets = [32, 0], sizes = [16, 16], strides = [1, 1]} : vector<80x16xf32> to vector<16x16xf32>
    %cst_24 = arith.constant dense<0.000000e+00> : vector<8x16xf32>
    %29 = tpu.matmul %20, %28, %cst_24 {dimension_numbers = #tpu.dot_dimension_numbers<[1], [0], [0], [1], [0, 0, 1, 1], [], []>} : vector<8x16xf32>, vector<16x16xf32>, vector<8x16xf32> -> vector<8x16xf32>
    %30 = vector.extract_strided_slice %23 {offsets = [48, 0], sizes = [16, 16], strides = [1, 1]} : vector<80x16xf32> to vector<16x16xf32>
    %cst_25 = arith.constant dense<0.000000e+00> : vector<8x16xf32>
    %31 = tpu.matmul %20, %30, %cst_25 {dimension_numbers = #tpu.dot_dimension_numbers<[1], [0], [0], [1], [0, 0, 1, 1], [], []>} : vector<8x16xf32>, vector<16x16xf32>, vector<8x16xf32> -> vector<8x16xf32>
    %32 = vector.extract_strided_slice %23 {offsets = [64, 0], sizes = [16, 16], strides = [1, 1]} : vector<80x16xf32> to vector<16x16xf32>
    %cst_26 = arith.constant dense<0.000000e+00> : vector<8x16xf32>
    %33 = tpu.matmul %20, %32, %cst_26 {dimension_numbers = #tpu.dot_dimension_numbers<[1], [0], [0], [1], [0, 0, 1, 1], [], []>} : vector<8x16xf32>, vector<16x16xf32>, vector<8x16xf32> -> vector<8x16xf32>
    %34 = arith.mulf %25, %25 : vector<8x16xf32>
    %35 = arith.mulf %27, %27 : vector<8x16xf32>
    %36 = arith.mulf %25, %27 : vector<8x16xf32>
    %37 = arith.subf %29, %34 : vector<8x16xf32>
    %38 = arith.subf %31, %35 : vector<8x16xf32>
    %39 = arith.subf %33, %36 : vector<8x16xf32>
    %cst_27 = arith.constant 2.000000e+00 : f32
    %40 = vector.broadcast %cst_27 : f32 to vector<8x16xf32>
    %41 = arith.mulf %40, %36 : vector<8x16xf32>
    %cst_28 = arith.constant 9.99999974E-5 : f32
    %42 = vector.broadcast %cst_28 : f32 to vector<8x16xf32>
    %43 = arith.addf %41, %42 : vector<8x16xf32>
    %cst_29 = arith.constant 2.000000e+00 : f32
    %44 = vector.broadcast %cst_29 : f32 to vector<8x16xf32>
    %45 = arith.mulf %44, %39 : vector<8x16xf32>
    %cst_30 = arith.constant 8.99999984E-4 : f32
    %46 = vector.broadcast %cst_30 : f32 to vector<8x16xf32>
    %47 = arith.addf %45, %46 : vector<8x16xf32>
    %48 = arith.mulf %43, %47 : vector<8x16xf32>
    %49 = arith.addf %34, %35 : vector<8x16xf32>
    %cst_31 = arith.constant 9.99999974E-5 : f32
    %50 = vector.broadcast %cst_31 : f32 to vector<8x16xf32>
    %51 = arith.addf %49, %50 : vector<8x16xf32>
    %52 = arith.addf %37, %38 : vector<8x16xf32>
    %cst_32 = arith.constant 8.99999984E-4 : f32
    %53 = vector.broadcast %cst_32 : f32 to vector<8x16xf32>
    %54 = arith.addf %52, %53 : vector<8x16xf32>
    %55 = arith.mulf %51, %54 : vector<8x16xf32>
    %56 = arith.subf %48, %55 : vector<8x16xf32>
    %57 = tpu.reciprocal %55 {approx = true} : vector<8x16xf32> -> vector<8x16xf32>
    %58 = arith.mulf %56, %57 : vector<8x16xf32>
    %cst_33 = arith.constant dense<0.000000e+00> : vector<8xf32>
    %59 = vector.multi_reduction <add>, %58, %cst_33 [1] : vector<8x16xf32> to vector<8xf32>
    %60 = vector.shape_cast %59 : vector<8xf32> to vector<8x1xf32>
    %cst_34 = arith.constant dense<0.000000e+00> : vector<1xf32>
    %61 = vector.multi_reduction <add>, %60, %cst_34 [0] : vector<8x1xf32> to vector<1xf32>
    %62 = vector.shape_cast %61 : vector<1xf32> to vector<1x1xf32>
    %cst_35 = arith.constant 0.027777778 : f32
    %63 = vector.broadcast %cst_35 : f32 to vector<1x1xf32>
    %64 = arith.mulf %62, %63 : vector<1x1xf32>
    %65 = tpu.concatenate %11, %64 in 1 : vector<1x1xf32>, vector<1x1xf32> -> vector<1x2xf32>
    %c0_36 = arith.constant 0 : index
    %c0_37 = arith.constant 0 : index
    %c0_38 = arith.constant 0 : index
    %c0_39 = arith.constant 0 : index
    %66 = vector.load %arg6[%c0_36, %c0_37, %c0_38, %c0_39] : memref<1x1x1x2xf32, #tpu.memory_space<vmem>>, vector<1x1x1x2xf32>
    %67 = vector.shape_cast %66 : vector<1x1x1x2xf32> to vector<1x2xf32>
    %68 = vector.shape_cast %65 : vector<1x2xf32> to vector<1x1x1x2xf32>
    tpu.vector_store %arg6[%c0_36, %c0_37, %c0_38, %c0_39], %68 {strides = array<i32>} : memref<1x1x1x2xf32, #tpu.memory_space<vmem>>, vector<1x1x1x2xf32>,
    return
  }
  func.func @transform_0(%arg0: i32, %arg1: i32) -> (i32, i32) {
    %c0_i32 = arith.constant 0 : i32
    %c0_i32_0 = arith.constant 0 : i32
    %c0_i32_1 = arith.constant 0 : i32
    return %c0_i32, %c0_i32_0 : i32, i32
  }
  func.func @transform_1(%arg0: i32, %arg1: i32) -> (i32, i32) {
    %c0_i32 = arith.constant 0 : i32
    %c0_i32_0 = arith.constant 0 : i32
    %c0_i32_1 = arith.constant 0 : i32
    return %c0_i32, %c0_i32_0 : i32, i32
  }
  func.func @transform_2(%arg0: i32, %arg1: i32) -> (i32, i32, i32, i32) {
    %c0_i32 = arith.constant 0 : i32
    %c0_i32_0 = arith.constant 0 : i32
    %c0_i32_1 = arith.constant 0 : i32
    return %arg0, %arg1, %c0_i32, %c0_i32_0 : i32, i32, i32, i32
  }
  func.func @transform_3(%arg0: i32, %arg1: i32) -> (i32, i32, i32, i32) {
    %c0_i32 = arith.constant 0 : i32
    %c0_i32_0 = arith.constant 0 : i32
    %c0_i32_1 = arith.constant 0 : i32
    return %arg0, %arg1, %c0_i32, %c0_i32_0 : i32, i32, i32, i32
  }
  func.func @transform_4(%arg0: i32, %arg1: i32) -> (i32, i32, i32, i32) {
    %c0_i32 = arith.constant 0 : i32
    %c0_i32_0 = arith.constant 0 : i32
    %c0_i32_1 = arith.constant 0 : i32
    return %arg0, %arg1, %c0_i32, %c0_i32_0 : i32, i32, i32, i32
  }
}

</mosaic_0001>

<bundles_post_ra>
// kernel: tpu_custom_call.1
= control target key start
LH: loop header
LB: loop body
LE: loop exit
PB: predicated region body
PF: predicated region fallthrough
CT: control target
= control target key end

     0   :  { %s1819_s0 = inlined_call_operand.hbm [shape: f32[8,16], index: 0, kind: input, shape index: {}]   ;;  %s1820_s1 = inlined_call_operand.hbm [shape: f32[16,16], index: 1, kind: input, shape index: {}]   ;;  %s1821_s2 = inlined_call_operand.hbm [shape: f32[2,3,16,16], index: 2, kind: input, shape index: {}]   ;;  %s1822_s3 = inlined_call_operand.hbm [shape: f32[2,3,16,16], index: 3, kind: input, shape index: {}]   ;;  %s1823_s4 = inlined_call_operand.vmem [shape: f32[2,3,1,2], index: 4, kind: output, shape index: {}]  }
   0x1   :  { %1839 = sst [smem:[#allocation18_spill]] %s1819_s0 }
   0x2   :  { %1840 = sst [smem:[#allocation19_spill]] %s1821_s2 }
   0x3   :  { %1841 = sst [smem:[#allocation20_spill]] %s1823_s4 }
   0x4   :  { %9 = vsyncpa [#allocation4], 0 }
   0x5   :  { %10 = vsyncpa [#allocation6], 0  ;;  %s1487_s15 = smov 0   ;;  %s1489_s16 = smov 0  }
   0x6   :  { %s1491_s17 = smov 0   ;;  %s1493_s18 = smov 0  }
   0x7   :  { %s1495_s19 = smov 0   ;;  %s1497_s20 = smov 0  }
   0x8   :  { %s1499_s21 = smov 0   ;;  %s1501_s22 = smov 0  }
   0x9 LB: > { %1842 = sst [smem:[#allocation12_spill]] %s1431_s17  ;;  %s1829_s23 = sadd.s32 4294967295, %s1451_s22   ;;  %s1451_s22 = sphi %s1501_s22, %s16_s22   ;;  %s1447_s21 = sphi %s1499_s21, %s1873_s21   ;;  %s1443_s20 = sphi %s1497_s20, %s1872_s20   ;;  %s1439_s19 = sphi %s1495_s19, %s1876_s19   ;;  %s1435_s18 = sphi %s1493_s18, %s1870_s18   ;;  %s1431_s17 = sphi %s1491_s17, %s1869_s17   ;;  %s1427_s16 = sphi %s1489_s16, %s1875_s16   ;;  %s1423_s15 = sphi %s1487_s15, %s1874_s15  }
   0xa   : > { %1843 = sst [smem:[#allocation13_spill]] %s1443_s20  ;;  %p86_p0 = scmp.ne.s32.totalorder %s1431_s17, %s1427_s16 }
   0xb   : > { %1844 = sst [smem:[#allocation14_spill]] %s1447_s21  ;;  %p87_p1 = scmp.eq.s32.totalorder %s1451_s22, 0 }
   0xc   : > { %p92_p2 = scmp.ne.s32.totalorder %s1427_s16, %s1423_s15  ;;  %p1533_p3 = scmp.eq.s32.totalorder %s1829_s23, 0 }
   0xd   : > { %p88_p4 = por %p87_p1, %p86_p0  ;;  %p1022_p5 = scmp.ge.s32.totalorder %s1451_s22, 1 }
   0xe   : > { %s1845_s25 = scalar_select %p1533_p3, 1, 0 }
   0xf   : > { %p1540_p6 = por %p1533_p3, %p92_p2  ;;  %p159_p7 = scmp.lt.s32.totalorder %s1451_s22, 7 }
  0x10   : > { %s1453_s28 = smov [#allocation3]   ;;  %p1185_p10 = scmp.lt.s32.totalorder %s1451_s22, 6 }
  0x11   : > { %s1846_s26 = scalar_select %p1540_p6, 1, 0 }
  0x12   : > { %p1545_p8 = pnand %p1022_p5, %p159_p7  ;;  %s172_s29 = sshll.u32 %s1453_s28, 4  ;;  %s173_s29 = int_to_ptr.vmem [resolvable:$true] %s172_s29 }
  0x13   : > { %p1558_p12 = pnand %p1185_p10, %p88_p4  ;;  %s1850_s0 = sld [smem:[#allocation18_spill]] }
  0x14   : > { %s1847_s27 = scalar_select %p1545_p8, 1, 0 }
  0x15   : > { %p1169_p9 = pneg %p1545_p8 }
  0x16   : > { %s1849_s5 = scalar_select %p1558_p12, 1, 0 }
  0x17   : > { %p1554_p11 = pnand %p1169_p9, %p1533_p3 }
  0x19   : > { %s1261_s8 = scalar_lea.hbm %s1850_s0, 128  ;;  %p1832_p0 = pneg %p1554_p11 }
  0x1a   : > { %p1262_p13 = scmp.ne.s32.totalorder %s1850_s0, %s1261_s8  ;;  %p1268_p4 = scmp.lt.u32.totalorder %s1261_s8, %s1850_s0 }
  0x1c   : > { %p1264_p1 = pnand %p1832_p0, %p1262_p13 }
  0x1e   : > { %p1265_p2 = pneg %p1264_p1 }
  0x20   : > { %p1270_p5 = pnand %p1268_p4, %p1265_p2 }
  0x22   : > { %1273 = shalt.err (!%p1270_p5)
}
  0x23   : > { %s1274_s13 = scalar_lea.vmem %s173_s29, 128  ;;  %p1282_p6 = scmp.lt.s32.totalorder %s173_s29, %s173_s29 }
  0x24   : > { %p1275_p7 = scmp.ne.s32.totalorder %s173_s29, %s1274_s13  ;;  %p1283_p3 = scmp.lt.s32.totalorder %s1274_s13, %s1274_s13 }
  0x26   : > { %p1277_p9 = pnand %p1275_p7, %p1832_p0  ;;  %p1284_p8 = por %p1283_p3, %p1282_p6 }
  0x28   : > { %p1278_p10 = pneg %p1277_p9 }
  0x2a   : > { %p1285_p12 = pnand %p1284_p8, %p1278_p10 }
  0x2c   : > { %1288 = shalt.err (!%p1285_p12)
}
  0x2d   : > { %1172 = dma.hbm_to_vmem [thread:$0]  (!%p1554_p11), %s1850_s0, 128, %s173_s29, [#allocation4]  }
  0x2e   : > { %s25_s28 = sadd.s32 1, %s1443_s20  ;;  %s28_s6 = sadd.s32 1, %s1447_s21 }
  0x2f   : > { %p26_p3 = scmp.ge.s32.totalorder %s25_s28, 3  ;;  %s196_s7 = sand.u32 1, %s1451_s22  }
  0x30   : > { %s198_s9 = sand.u32 1, %s1431_s17   ;;  %s1027_s11 = sshll.u32 %s1443_s20, 1 }
  0x31   : > { %s1878_s28 = smov (%p26_p3, %s25_s28), 0  ;;  %s1880_s6 = smov (!%p26_p3, %s28_s6), %s1447_s21 }
  0x32   : > { %1851 = sst [smem:[#allocation15_spill]] %s1878_s28  ;;  %s75_s8 = ssub.s32 %s1443_s20, %s1878_s28 }
  0x33   : > { %p30_p6 = scmp.ge.s32.totalorder %s1880_s6, 2  ;;  %s1593_s10 = sshll.u32 %s198_s9, 4 }
  0x34   : > { %s1154_s29 = smul.u32 6, %s1447_s21  ;;  %s200_s13 = scalar_lea.vmem [#allocation7], %s1593_s10 }
  0x35   : > { %s1882_s6 = smov (%p30_p6, %s1880_s6), 0  ;;  %s209_s14 = sshll.u32 %s200_s13, 4  ;;  %s1612_s14 = int_to_ptr.vmem [resolvable:$true] %s209_s14 }
  0x36   : > { %1852 = sst [smem:[#allocation16_spill]] %s1882_s6  ;;  %s74_s12 = ssub.s32 %s1447_s21, %s1882_s6 }
  0x37   : > { %s76_s15 = sor.u32 %s75_s8, %s74_s12  ;;  %s1602_s23 = sadd.s32 %s1154_s29, %s1027_s11 }
  0x38   : > { %p77_p8 = scmp.eq.s32.totalorder %s76_s15, 0  ;;  %s1831_s24 = sshll.u32 %s1602_s23, 7 }
  0x39   : > { %s1853_s2 = sld [smem:[#allocation19_spill]]  ;;  %s1854_s13 = sadd.s32 1, %s1431_s17 }
  0x3a   : > { %s1617_s8 = scalar_select %p77_p8, %s1431_s17, %s1854_s13  }
  0x3b   : > { %s1619_s11 = scalar_lea.sflag [#allocation4], %s196_s7  ;;  %p1856_p13 = scmp.ne.s32.totalorder %s1849_s5, 0 }
  0x3c   : > { %1855 = sst [smem:[#allocation17_spill]] %s1617_s8 }
  0x3d   : > { %p1837_p1 = pneg %p1856_p13 }
  0x3f   : > { %s1610_s28 = scalar_lea.hbm %s1853_s2, %s1831_s24  ;;  %s1294_s15 = scalar_lea.hbm %s1853_s2, 1536 }
  0x40   : > { %s1289_s29 = scalar_lea.hbm %s1610_s28, 256  ;;  %p1295_p5 = scmp.lt.u32.totalorder %s1610_s28, %s1853_s2 }
  0x41   : > { %p1290_p12 = scmp.ne.s32.totalorder %s1610_s28, %s1289_s29  ;;  %p1296_p7 = scmp.lt.u32.totalorder %s1294_s15, %s1289_s29 }
  0x42   : > { %p1298_p10 = scmp.lt.u32.totalorder %s1289_s29, %s1610_s28 }
  0x43   : > { %p1292_p2 = pnand %p1837_p1, %p1290_p12  ;;  %p1297_p9 = por %p1296_p7, %p1295_p5 }
  0x45   : > { %p1293_p4 = pneg %p1292_p2  ;;  %p1299_p3 = por %p1298_p10, %p1297_p9 }
  0x47   : > { %p1300_p6 = pnand %p1299_p3, %p1293_p4 }
  0x49   : > { %1303 = shalt.err (!%p1300_p6)
}
  0x4a   : > { %s1304_s7 = scalar_lea.vmem %s1612_s14, 256  ;;  %s1454_s13 = smov [#allocation7]  }
  0x4b   : > { %p1305_p8 = scmp.ne.s32.totalorder %s1612_s14, %s1304_s7  ;;  %s1309_s0 = sshll.u32 %s1454_s13, 4  ;;  %s1310_s0 = int_to_ptr.vmem [resolvable:$false] %s1309_s0 }
  0x4c   : > { %s1311_s24 = scalar_lea.vmem %s1310_s0, 512  ;;  %p1312_p0 = scmp.lt.s32.totalorder %s1612_s14, %s1310_s0 }
  0x4d   : > { %p1307_p12 = pnand %p1305_p8, %p1837_p1  ;;  %p1313_p5 = scmp.lt.s32.totalorder %s1311_s24, %s1304_s7 }
  0x4f   : > { %p1308_p2 = pneg %p1307_p12  ;;  %p1314_p7 = por %p1313_p5, %p1312_p0 }
  0x51   : > { %p1315_p9 = pnand %p1314_p7, %p1308_p2 }
  0x53   : > { %1318 = shalt.err (!%p1315_p9)
}
  0x54   : > { %s1455_s29 = smov 128   ;;  %s1456_s12 = smov 8  }
  0x55   : > { %1179 = dma.hbm_to_vmem [thread:$0]  (!%p1856_p13), %s1610_s28, 256, %s1612_s14, %s1619_s11, %s1455_s29, %s1455_s29, %s1456_s12  }
  0x56   : > { %s1457_s15 = smov [#allocation5]   ;;  %s1857_s7 = sshll.u32 %s1602_s23, 7 }
  0x57   : > { %s182_s9 = sshll.u32 %s1457_s15, 4  ;;  %s1655_s24 = scalar_lea.hbm %s1822_s3, %s1857_s7  ;;  %s183_s9 = int_to_ptr.vmem [resolvable:$true] %s182_s9 }
  0x58   : > { %s223_s2 = scalar_lea.vmem [#allocation8], %s1593_s10  ;;  %s1319_s8 = scalar_lea.hbm %s1820_s1, 256 }
  0x59   : > { %s232_s6 = sshll.u32 %s223_s2, 4  ;;  %p1320_p0 = scmp.ne.s32.totalorder %s1820_s1, %s1319_s8  ;;  %s1681_s6 = int_to_ptr.vmem [resolvable:$true] %s232_s6 }
  0x5a   : > { %p1858_p4 = pneg %p1554_p11  ;;  %p1326_p6 = scmp.lt.u32.totalorder %s1319_s8, %s1820_s1 }
  0x5c   : > { %p1322_p10 = pnand %p1320_p0, %p1858_p4 }
  0x5e   : > { %p1323_p3 = pneg %p1322_p10 }
  0x60   : > { %p1328_p8 = pnand %p1326_p6, %p1323_p3 }
  0x62   : > { %1331 = shalt.err (!%p1328_p8)
}
  0x63   : > { %s1332_s10 = scalar_lea.vmem %s183_s9, 256  ;;  %p1859_p2 = pmov %p1858_p4 }
  0x64   : > { %p1333_p12 = scmp.ne.s32.totalorder %s183_s9, %s1332_s10  ;;  %p1340_p9 = scmp.lt.s32.totalorder %s183_s9, %s183_s9 }
  0x65   : > { %p1341_p1 = scmp.lt.s32.totalorder %s1332_s10, %s1332_s10 }
  0x66   : > { %p1335_p5 = pnand %p1333_p12, %p1859_p2 }
  0x67   : > { %p1342_p13 = por %p1341_p1, %p1340_p9 }
  0x68   : > { %p1336_p7 = pneg %p1335_p5 }
  0x6a   : > { %p1343_p0 = pnand %p1342_p13, %p1336_p7 }
  0x6c   : > { %1346 = shalt.err (!%p1343_p0)
}
  0x6d   : > { %1175 = dma.hbm_to_vmem [thread:$0]  (!%p1554_p11), %s1820_s1, 256, %s183_s9, [#allocation6], %s1455_s29, %s1455_s29, %s1456_s12  }
  0x6e   : > { %s1347_s17 = scalar_lea.hbm %s1655_s24, 256  ;;  %p1860_p13 = scmp.ne.s32.totalorder %s1849_s5, 0 }
  0x6f   : > { %p1348_p1 = scmp.ne.s32.totalorder %s1655_s24, %s1347_s17  ;;  %s1352_s30 = scalar_lea.hbm %s1822_s3, 1536 }
  0x70   : > { %p1861_p4 = pneg %p1860_p13  ;;  %p1353_p6 = scmp.lt.u32.totalorder %s1655_s24, %s1822_s3 }
  0x71   : > { %p1354_p8 = scmp.lt.u32.totalorder %s1352_s30, %s1347_s17  ;;  %p1356_p2 = scmp.lt.u32.totalorder %s1347_s17, %s1655_s24 }
  0x72   : > { %p1350_p10 = pnand %p1348_p1, %p1861_p4 }
  0x73   : > { %p1355_p12 = por %p1354_p8, %p1353_p6 }
  0x74   : > { %p1351_p3 = pneg %p1350_p10 }
  0x75   : > { %p1357_p11 = por %p1356_p2, %p1355_p12 }
  0x77   : > { %p1358_p5 = pnand %p1357_p11, %p1351_p3 }
  0x79   : > { %1361 = shalt.err (!%p1358_p5)
}
  0x7a   : > { %s1362_s15 = scalar_lea.vmem %s1681_s6, 256  ;;  %p1862_p9 = pmov %p1861_p4 }
  0x7b   : > { %p1363_p7 = scmp.ne.s32.totalorder %s1681_s6, %s1362_s15  ;;  %s1458_s9 = smov [#allocation8]  }
  0x7c   : > { %s1367_s7 = sshll.u32 %s1458_s9, 4  ;;  %s1368_s7 = int_to_ptr.vmem [resolvable:$false] %s1367_s7 }
  0x7d   : > { %p1365_p0 = pnand %p1363_p7, %p1862_p9  ;;  %s1369_s13 = scalar_lea.vmem %s1368_s7, 512 }
  0x7e   : > { %p1370_p4 = scmp.lt.s32.totalorder %s1681_s6, %s1368_s7  ;;  %p1371_p10 = scmp.lt.s32.totalorder %s1369_s13, %s1362_s15 }
  0x7f   : > { %p1366_p1 = pneg %p1365_p0 }
  0x80   : > { %p1372_p6 = por %p1371_p10, %p1370_p4 }
  0x82   : > { %p1373_p8 = pnand %p1372_p6, %p1366_p1 }
  0x84   : > { %1376 = shalt.err (!%p1373_p8)
}
  0x85   : > { %1182 = dma.hbm_to_vmem [thread:$0]  (!%p1860_p13), %s1655_s24, 256, %s1681_s6, %s1619_s11, %s1455_s29, %s1455_s29, %s1456_s12  }
  0x86   : > { %p1863_p3 = scmp.ne.s32.totalorder %s1847_s27, 0 }
  0x87   : > { %p1864_p12 = scmp.ne.s32.totalorder (!%p1863_p3), %s1845_s25, 0 }
  0x88   : > { %244 = sbr.rel (%p1863_p3) target bundleno = 785 (0x311), region = 36 }
  0x8f   : > { %1410 = dma.done.wait (%p1864_p12), [#allocation4], 128  }
  0x90   : > { %1412 = vsyncadd (%p1864_p12), [#allocation4], 4294967168 }
  0x91   : > { %1414 = dma.done.wait (%p1864_p12), [#allocation6], 256  }
  0x92   : > { %1416 = vsyncadd (%p1864_p12), [#allocation6], 4294967040  ;;  %s1865_s5 = sadd.s32 4294967295, %s1451_s22   ;;  %s256_s11 = sand.u32 1, %s1427_s16  }
  0x93   : > { %s254_s6 = sand.u32 1, %s1865_s5   ;;  %s1035_s27 = sshll.u32 %s256_s11, 4 }
  0x94   : > { %s255_s29 = scalar_lea.sflag [#allocation4], %s254_s6  ;;  %s258_s12 = scalar_lea.vmem [#allocation7], %s1035_s27 }
  0x95   : > { %p1866_p13 = scmp.ne.s32.totalorder %s1846_s26, 0 }
  0x97   : > { %1418 = dma.done.wait (%p1866_p13), %s255_s29, 512  }
  0x98   : > { %1420 = vsyncadd (%p1866_p13), %s255_s29, 4294966784  ;;  %vm314_vm0 = vcmask 130048   ;;  %v346_v0 = vld [vmem:[#allocation5] sm:$0xff]  ;;  %v347_v1 = vld [vmem:[#allocation5 + $0x8] sm:$0xff]  ;;  %s267_s25 = scalar_lea.vmem [#allocation8], %s1035_s27  ;;  %v1459_v23 = vmov 0.0|0.0  }
  0x99   : > { %v1727_v2 = vld [vmem:[%s258_s12] sm:$0xff]  ;;  %v1135_v3 = vpack.c.bf16 %v347_v1, %v346_v0  ;;  %v1731_v4 = vld [vmem:[%s258_s12 + $0x8] sm:$0xff]  ;;  %1139 = vmatprep.subr.bf16.mxu1 %v1459_v23  ;;  %vm1460_vm1 = vmmov 0   ;;  %v1461_v24 = vmov 0.0   ;;  %p299_p2 = scmp.lt.s32.totalorder %s1439_s19, 1  ;;  %p301_p11 = scmp.lt.s32.totalorder %s1435_s18, 2 }
  0x9a   : > { %329 = vst.msk [vmem:[#allocation2] sm:$0xff] %vm314_vm0, %v1727_v2  ;;  %v1733_v5 = vld [vmem:[%s267_s25] sm:$0xff]  ;;  %v1735_v6 = vld [vmem:[%s267_s25 + $0x8] sm:$0xff]  ;;  %v333_v7 = vmul.f32 %v1727_v2, %v1727_v2  ;;  %330 = vst.msk [vmem:[#allocation2 + $0x8] sm:$0xff] %vm314_vm0, %v1731_v4  ;;  %v334_v8 = vmul.f32 %v1731_v4, %v1731_v4  ;;  %1104 = vmatprep.mubr.msk.f32.mxu1 %vm1460_vm1, %v1461_v24  ;;  %vm885_vm2 = vcmask 7168   ;;  %s1867_s28 = sld [smem:[#allocation20_spill]] }
  0x9b   : > { %331 = vst.msk [vmem:[#allocation2 + $0x10] sm:$0xff] %vm314_vm0, %v1733_v5  ;;  %332 = vst.msk [vmem:[#allocation2 + $0x18] sm:$0xff] %vm314_vm0, %v1735_v6  ;;  %v337_v9 = vmul.f32 %v1733_v5, %v1733_v5  ;;  %v338_v10 = vmul.f32 %v1735_v6, %v1735_v6  ;;  %v341_v11 = vmul.f32 %v1733_v5, %v1727_v2  ;;  %1136 = vmatprep.subr.bf16.mxu0 %v1135_v3  ;;  %v345_v29 = vld [vmem:[#allocation3] sm:$0xff]  ;;  %s1884_s19 = smov (!%p299_p2, %s1439_s19), 1  ;;  %s1886_s18 = smov (!%p301_p11, %s1435_s18), 2  ;;  %vm887_vm3 = vcmask 8192  }
  0x9c   : > { %335 = vst.msk [vmem:[#allocation2 + $0x20] sm:$0xff] %vm314_vm0, %v333_v7  ;;  %v342_v12 = vmul.f32 %v1735_v6, %v1731_v4  ;;  %1138 = vmatpush3.bf16.msra.mxu0 %v1135_v3  ;;  %336 = vst.msk [vmem:[#allocation2 + $0x28] sm:$0xff] %vm314_vm0, %v334_v8  ;;  %v310_v41 = vsub.f32 %v1727_v2, %v1733_v5  ;;  %v311_v44 = vsub.f32 %v1731_v4, %v1735_v6  ;;  %s1156_s26 = smul.u32 3, %s1884_s19 }
  0x9d   : > { %339 = vst.msk [vmem:[#allocation2 + $0x30] sm:$0xff] %vm314_vm0, %v337_v9  ;;  %340 = vst.msk [vmem:[#allocation2 + $0x38] sm:$0xff] %vm314_vm0, %v338_v10 }
  0x9e   : > { %343 = vst.msk [vmem:[#allocation2 + $0x40] sm:$0xff] %vm314_vm0, %v341_v11  ;;  %344 = vst.msk [vmem:[#allocation2 + $0x48] sm:$0xff] %vm314_vm0, %v342_v12  ;;  %v312_v42 = vand.u32 2147483647, %v310_v41  ;;  %v313_v45 = vand.u32 2147483647, %v311_v44  ;;  %s304_s0 = sadd.s32 %s1156_s26, %s1886_s18 }
  0xa0   : > { %v315_v43 = vsel %vm314_vm0, %v312_v42, 0.0  ;;  %v318_v46 = vsel %vm314_vm0, %v313_v45, 0.0  ;;  %s305_s10 = scalar_lea.vmem %s1867_s28, %s304_s0 }
  0xa1   : > { %v348_v13 = vld [vmem:[#allocation2] sm:$0xff]  ;;  %v349_v14 = vld [vmem:[#allocation2 + $0x8] sm:$0xff]  ;;  %316 = vadd.xlane.f32.xlu0 %v315_v43 }
  0xa2   : > { %1085 = vmatprep.mubr.msk.f32.mxu0 %vm314_vm0, %v348_v13  ;;  %v350_v15 = vld [vmem:[#allocation2 + $0x10] sm:$0xff]  ;;  %v351_v16 = vld [vmem:[#allocation2 + $0x18] sm:$0xff] }
  0xa3   : > { %1086 = vmatmul.mubr.msk.f32.vlgmr.msra.gmra.mrb[0].mxu0 %vm314_vm0, %v349_v14  ;;  %v352_v17 = vld [vmem:[#allocation2 + $0x20] sm:$0xff]  ;;  %v353_v18 = vld [vmem:[#allocation2 + $0x28] sm:$0xff] }
  0xa4   : > { %1088 = vmatprep.mubr.msk.f32.mxu0 %vm314_vm0, %v350_v15  ;;  %v354_v19 = vld [vmem:[#allocation2 + $0x30] sm:$0xff]  ;;  %v355_v20 = vld [vmem:[#allocation2 + $0x38] sm:$0xff] }
  0xa5   : > { %v356_v21 = vld [vmem:[#allocation2 + $0x40] sm:$0xff]  ;;  %v357_v22 = vld [vmem:[#allocation2 + $0x48] sm:$0xff]  ;;  %319 = vadd.xlane.f32.xlu0 %v318_v46 }
  0xa7   : > { %1089 = vmatmul.mubr.msk.f32.gmra.mrb[2].mxu0 %vm314_vm0, %v351_v16 }
  0xa8   : > { %1091 = vmatprep.mubr.msk.f32.mxu0 %vm314_vm0, %v352_v17 }
  0xab   : > { %1092 = vmatmul.mubr.msk.f32.gmra.mrb[4].mxu0 %vm314_vm0, %v353_v18 }
  0xac   : > { %1094 = vmatprep.mubr.msk.f32.mxu0 %vm314_vm0, %v354_v19 }
  0xaf   : > { %1095 = vmatmul.mubr.msk.f32.gmra.mrb[6].mxu0 %vm314_vm0, %v355_v20 }
  0xb0   : > { %1097 = vmatprep.mubr.msk.f32.mxu0 %vm314_vm0, %v356_v21 }
  0xb3   : > { %1098 = vmatmul.mubr.msk.f32.gmra.mrb[8].mxu0 %vm314_vm0, %v357_v22 }
 0x12e   : > { %v317_v13 = vpop.xlane.xlu0 %316 }
 0x132   : > { %v320_v14 = vpop.xlane.xlu0 %319 }
 0x133   : > { %v321_v15 = vadd.f32 %v320_v14, %v317_v13 }
 0x135   : > { %v322_v16 = vrot.slane %v321_v15, 4 }
 0x137   : > { %v323_v17 = vadd.f32 %v322_v16, %v321_v15 }
 0x139   : > { %v324_v18 = vrot.slane %v323_v17, 2 }
 0x13b   : > { %v325_v20 = vadd.f32 %v324_v18, %v323_v17 }
 0x176   : > { %v1087_v25 = vpop.f32.mrb[0].mxu0 }
 0x177   : > { %v454_v26 = vpop.f32.mrb[1].mxu0 }
 0x178   : > { %v1140_v27 = vpack.c.bf16 %v1087_v25, %v454_v26 }
 0x17a   : > { %v1090_v28 = vpop.f32.mrb[2].mxu0  ;;  %1141 = vmatpush3.bf16.msra.mxu1 %v1140_v27 }
 0x17b   : > { %v464_v30 = vpop.f32.mrb[3].mxu0  ;;  %1142 = vmatprep.subr.bf16.mxu1 %v1459_v23 }
 0x17c   : > { %v1143_v31 = vpack.c.bf16 %v1090_v28, %v464_v30 }
 0x17d   : > { %1105 = vmatmul.mubr.msk.f32.vlgmr.msra.gmra.mrb[0].mxu1 %vm314_vm0, %v345_v29 }
 0x17e   : > { %v1093_v32 = vpop.f32.mrb[4].mxu0  ;;  %1144 = vmatpush3.bf16.msra.mxu1 %v1143_v31  ;;  %1111 = vmatprep.mubr.msk.f32.mxu1 %vm1460_vm1, %v1461_v24 }
 0x17f   : > { %v474_v33 = vpop.f32.mrb[5].mxu0  ;;  %1145 = vmatprep.subr.bf16.mxu1 %v1459_v23 }
 0x180   : > { %v1146_v34 = vpack.c.bf16 %v1093_v32, %v474_v33 }
 0x181   : > { %1112 = vmatmul.mubr.msk.f32.vlgmr.msra.gmra.mrb[2].mxu1 %vm314_vm0, %v345_v29 }
 0x182   : > { %v1096_v35 = vpop.f32.mrb[6].mxu0  ;;  %1147 = vmatpush3.bf16.msra.mxu1 %v1146_v34  ;;  %1118 = vmatprep.mubr.msk.f32.mxu1 %vm1460_vm1, %v1461_v24 }
 0x183   : > { %v484_v36 = vpop.f32.mrb[7].mxu0  ;;  %1148 = vmatprep.subr.bf16.mxu1 %v1459_v23 }
 0x184   : > { %v1149_v37 = vpack.c.bf16 %v1096_v35, %v484_v36 }
 0x185   : > { %1119 = vmatmul.mubr.msk.f32.vlgmr.msra.gmra.mrb[4].mxu1 %vm314_vm0, %v345_v29 }
 0x186   : > { %v1099_v38 = vpop.f32.mrb[8].mxu0  ;;  %1150 = vmatpush3.bf16.msra.mxu1 %v1149_v37  ;;  %1125 = vmatprep.mubr.msk.f32.mxu1 %vm1460_vm1, %v1461_v24 }
 0x187   : > { %v494_v39 = vpop.f32.mrb[9].mxu0  ;;  %1151 = vmatprep.subr.bf16.mxu1 %v1459_v23  ;;  %v326_v23 = vrot.slane %v325_v20, 1 }
 0x188   : > { %v1152_v40 = vpack.c.bf16 %v1099_v38, %v494_v39 }
 0x189   : > { %1126 = vmatmul.mubr.msk.f32.vlgmr.msra.gmra.mrb[6].mxu1 %vm314_vm0, %v345_v29  ;;  %v327_v26 = vadd.f32 %v326_v23, %v325_v20 }
 0x18a   : > { %1153 = vmatpush3.bf16.msra.mxu1 %v1152_v40  ;;  %1132 = vmatprep.mubr.msk.f32.mxu1 %vm1460_vm1, %v1461_v24 }
 0x18d   : > { %1133 = vmatmul.mubr.msk.f32.vlgmr.msra.gmra.mrb[8].mxu1 %vm314_vm0, %v345_v29  ;;  %v328_v29 = vmul.f32 0.00390625, %v327_v26 }
 0x250   : > { %v572_v47 = vpop.f32.mrb[0].mxu1 }
 0x251   : > { %v1106_v48 = vpop.f32.mrb[1].mxu1  ;;  %v856_v50 = vmul.f32 %v572_v47, %v572_v47 }
 0x254   : > { %v642_v49 = vpop.f32.mrb[2].mxu1 }
 0x255   : > { %v857_v51 = vmul.f32 %v642_v49, %v642_v49  ;;  %v858_v52 = vmul.f32 %v642_v49, %v572_v47  ;;  %v1113_v53 = vpop.f32.mrb[3].mxu1 }
 0x257   : > { %v867_v54 = vadd.f32 %v857_v51, %v856_v50  ;;  %v862_v63 = vmul.f32 2.0, %v858_v52 }
 0x258   : > { %v712_v55 = vpop.f32.mrb[4].mxu1 }
 0x259   : > { %v859_v56 = vsub.f32 %v712_v55, %v856_v50  ;;  %v1120_v57 = vpop.f32.mrb[5].mxu1  ;;  %v868_v0 = vadd.f32 0.0001, %v867_v54  ;;  %v863_v6 = vadd.f32 0.0001, %v862_v63 }
 0x25c   : > { %v782_v58 = vpop.f32.mrb[6].mxu1 }
 0x25d   : > { %v860_v59 = vsub.f32 %v782_v58, %v857_v51  ;;  %v1127_v60 = vpop.f32.mrb[7].mxu1 }
 0x25f   : > { %v869_v61 = vadd.f32 %v860_v59, %v859_v56 }
 0x260   : > { %v852_v62 = vpop.f32.mrb[8].mxu1 }
 0x261   : > { %v870_v1 = vadd.f32 0.0009, %v869_v61  ;;  %v861_v2 = vsub.f32 %v852_v62, %v858_v52  ;;  %v1134_v3 = vpop.f32.mrb[9].mxu1 }
 0x263   : > { %v871_v4 = vmul.f32 %v870_v1, %v868_v0  ;;  %v864_v5 = vmul.f32 2.0, %v861_v2 }
 0x265   : > { %1259 = vrcp.f32 %v871_v4  ;;  %v865_v7 = vadd.f32 0.0009, %v864_v5 }
 0x267   : > { %v866_v8 = vmul.f32 %v865_v7, %v863_v6 }
 0x269   : > { %v872_v9 = vsub.f32 %v866_v8, %v871_v4 }
 0x26f   : > { %v1260_v10 = vpop.eup %1259 }
 0x270   : > { %v874_v11 = vmul.f32 %v1260_v10, %v872_v9 }
 0x272   : > { %v875_v12 = vsel %vm314_vm0, %v874_v11, 0.0 }
 0x273   : > { %876 = vadd.xlane.f32.xlu1 %v875_v12 }
 0x300   : > { %v877_v19 = vpop.xlane.xlu1 %876 }
 0x301   : > { %v878_v21 = vrot.slane %v877_v19, 4 }
 0x303   : > { %v879_v22 = vadd.f32 %v878_v21, %v877_v19 }
 0x305   : > { %v880_v24 = vrot.slane %v879_v22, 2 }
 0x307   : > { %v881_v25 = vadd.f32 %v880_v24, %v879_v22 }
 0x309   : > { %v882_v27 = vrot.slane %v881_v25, 1 }
 0x30b   : > { %v883_v28 = vadd.f32 %v882_v27, %v881_v25 }
 0x30d   : > { %v884_v30 = vmul.f32 0.027777778, %v883_v28 }
 0x30f   : > { %v886_v31 = vsel %vm885_vm2, %v328_v29, %v884_v30 }
 0x310   : > { %888 = vst.msk [vmem:[%s305_s10] sm:$0x1] %vm887_vm3, %v886_v31 }
 0x311 PF: > { %s16_s22 = sadd.s32 1, %s1451_s22   ;;  %s1868_s19 = sld [smem:[#allocation12_spill]] }
 0x312   : > { %p13_p5 = scmp.ge.s32.totalorder %s16_s22, 8   ;;  %s1869_s17 = sld [smem:[#allocation17_spill]] }
 0x313   : > { %s1870_s18 = sld [smem:[#allocation13_spill]]  ;;  %s1871_s2 = sld [smem:[#allocation14_spill]] }
 0x314   : > { %s1872_s20 = sld [smem:[#allocation15_spill]]  ;;  %s1873_s21 = sld [smem:[#allocation16_spill]] }
 0x315   : > { %s1874_s15 = smov %s1427_s16  ;;  %15 = sbr.rel (!%p13_p5) target bundleno = 9 (0x9), region = 94 }
 0x317   : > { %s1875_s16 = smov %s1868_s19 }
 0x319   : > { %s1876_s19 = smov %s1871_s2 }
 0x31c   :  { %914 = vsyncpa [#allocation4], 1 }
 0x31d   :  { %916 = vsyncpa [#allocation4 + $0x1], 1 }
 0x31e   :  { %917 = vsyncpa [#allocation6], 1 }

</bundles_post_ra>
